<compile_context>
chip_gen: v7x
topology: tpu7x:2x2x1
jax: 0.10.0
libtpu: 0.0.40
codegen_flags: <defaults>
</compile_context>

<pallas_src>
import functools

import jax
import jax.numpy as jnp
from jax.experimental import pallas as pl
from jax.experimental.pallas import tpu as pltpu

# Module hyper-parameters (from the PyTorch source)
N_EMBED = 128          # C
BLOCK_SIZE = 256       # max sequence length (causal mask extent)
DROPOUT = 0.2          # unused in eval mode


def _head_kernel(mask_ref, x_ref, w_ref, o_ref, *, head_size):
    """One batch-block per grid step.

    mask_ref : (T, T)        VMEM, resident additive causal bias (0 / -1e30)
    x_ref    : (Bb, T, C)    VMEM
    w_ref    : (C, Wp)       VMEM, resident fused [Wq*scale | Wk | Wv] (bf16)
    o_ref    : (Bb, T, H)    VMEM
    """
    bb, T, C = x_ref.shape
    H = head_size
    # Key-chunk size for the online softmax: 128 when it divides T, else all of T.
    TK = 128 if (T > 128 and T % 128 == 0) else T
    n_chunks = T // TK

    # Fused QKV projection for every batch row in this block: one lane-dense
    # bf16 MXU matmul with f32 accumulation.
    x = x_ref[...].reshape(bb * T, C).astype(jnp.bfloat16)
    qkv = jnp.dot(x, w_ref[...], preferred_element_type=jnp.float32)
    qkv = qkv.astype(jnp.bfloat16)                      # (Bb*T, Wp)

    for b in range(bb):                                 # static unroll
        blk = qkv[b * T:(b + 1) * T]                    # (T, Wp)
        q = blk[:, 0:H]                                 # already scaled by C**-0.5
        k = blk[:, H:2 * H]
        v = blk[:, 2 * H:3 * H]

        m = jnp.full((T, 1), -1e30, jnp.float32)        # running max
        l = jnp.zeros((T, 1), jnp.float32)              # running denom
        acc = jnp.zeros((T, H), jnp.float32)            # running numerator

        for c in range(n_chunks):                       # static unroll (<= 2)
            c0 = c * TK
            # Scores: contract last dims directly (no transpose materialized).
            s = jax.lax.dot_general(
                q, k[c0:c0 + TK],
                dimension_numbers=(((1,), (1,)), ((), ())),
                preferred_element_type=jnp.float32)     # (T, TK) f32
            s = s + mask_ref[:, c0:c0 + TK]             # additive causal bias

            m_new = jnp.maximum(m, jnp.max(s, axis=-1, keepdims=True))
            alpha = jnp.exp(m - m_new)
            p = jnp.exp(s - m_new)
            l = alpha * l + jnp.sum(p, axis=-1, keepdims=True)
            acc = alpha * acc + jnp.dot(p.astype(jnp.bfloat16), v[c0:c0 + TK],
                                        preferred_element_type=jnp.float32)
            m = m_new

        out = acc * pl.reciprocal(l, approx=True)
        # Dropout on the attention weights is identity in eval mode.
        o_ref[b] = out.astype(o_ref.dtype)


def _pick_block_batch(B):
    """Batch rows per grid step: as large as practical while keeping >= 2 grid
    steps (so both v7x TensorCores get work) and an even split of B."""
    if B <= 1:
        return 1
    target = min(8, max(1, B // 2))
    for bb in range(target, 0, -1):
        if B % bb == 0:
            return bb
    return 1


def head_forward(x, w_query, w_key, w_value):
    """x: (B, T, C) float32; w_*: (C, H). Returns (B, T, H) float32."""
    B, T, C = x.shape
    H = w_query.shape[1]
    assert C == N_EMBED and T <= BLOCK_SIZE
    assert w_query.shape == (C, H) and w_key.shape == (C, H) and w_value.shape == (C, H)

    # Fused projection weight [Wq * C**-0.5 | Wk | Wv], zero-padded on the lane
    # axis to a multiple of 128 so the projection matmul is lane-dense, cast bf16.
    scale = float(C) ** -0.5
    w_fused = jnp.concatenate([w_query * scale, w_key, w_value], axis=1)   # (C, 3H)
    wp = ((3 * H + 127) // 128) * 128
    if wp != 3 * H:
        w_fused = jnp.pad(w_fused, ((0, 0), (0, wp - 3 * H)))
    w_fused = w_fused.astype(jnp.bfloat16)

    # Additive causal-mask bias, built once; kept resident across the grid.
    row = jax.lax.broadcasted_iota(jnp.int32, (T, T), 0)
    col = jax.lax.broadcasted_iota(jnp.int32, (T, T), 1)
    mask_bias = jnp.where(col > row, jnp.float32(-1e30), jnp.float32(0.0))

    bb = _pick_block_batch(B)
    grid = (B // bb,)

    kernel = functools.partial(_head_kernel, head_size=H)
    return pl.pallas_call(
        kernel,
        out_shape=jax.ShapeDtypeStruct((B, T, H), jnp.float32),
        grid_spec=pltpu.PrefetchScalarGridSpec(
            num_scalar_prefetch=0,
            grid=grid,
            in_specs=[
                pl.BlockSpec((T, T), lambda i: (0, 0)),          # causal bias (resident)
                pl.BlockSpec((bb, T, C), lambda i: (i, 0, 0)),   # x batch-block
                pl.BlockSpec((C, wp), lambda i: (0, 0)),         # fused W (resident)
            ],
            out_specs=pl.BlockSpec((bb, T, H), lambda i: (i, 0, 0)),
        ),
        compiler_params=pltpu.CompilerParams(
            dimension_semantics=("parallel",),
        ),
    )(mask_bias, x, w_fused)


def head_reference(x, w_query, w_key, w_value):
    """Pure-JAX f32 reference mirroring the PyTorch forward (eval mode)."""
    B, T, C = x.shape
    q = x @ w_query
    k = x @ w_key
    v = x @ w_value
    wei = (q @ jnp.swapaxes(k, -2, -1)) * (C ** -0.5)
    mask = jnp.tril(jnp.ones((T, T), dtype=bool))
    wei = jnp.where(mask, wei, -jnp.inf)
    wei = jax.nn.softmax(wei, axis=-1)
    return wei @ v


if __name__ == "__main__":
    B, T, C = 2, 8, N_EMBED
    HEAD_SIZE = 32

    key = jax.random.PRNGKey(0)
    kx, kq, kk, kv = jax.random.split(key, 4)

    x = jax.random.normal(kx, (B, T, C), dtype=jnp.float32)
    # nn.Linear-style init (deterministic, bound 1/sqrt(C)).
    bound = 1.0 / (C ** 0.5)
    w_query = jax.random.uniform(kq, (C, HEAD_SIZE), jnp.float32, -bound, bound)
    w_key = jax.random.uniform(kk, (C, HEAD_SIZE), jnp.float32, -bound, bound)
    w_value = jax.random.uniform(kv, (C, HEAD_SIZE), jnp.float32, -bound, bound)

    out = jax.block_until_ready(head_forward(x, w_query, w_key, w_value))
    ref = head_reference(x, w_query, w_key, w_value)

    assert out.shape == (B, T, HEAD_SIZE)
    # bf16 MXU operands with f32 accumulation -> small rounding vs. the f32 ref.
    max_err = float(jnp.max(jnp.abs(out - ref)))
    assert jnp.allclose(out, ref, atol=5e-2, rtol=5e-2), f"mismatch vs reference (max err {max_err})"

    print("KERNEL_OK")
</pallas_src>

<mosaic_0001>
module attributes {stable_mosaic.version = 11 : i64} {
  func.func @_head_kernel(%arg0: i32, %arg1: memref<8x8xf32, #tpu.memory_space<vmem>>, %arg2: memref<1x8x128xf32, #tpu.memory_space<vmem>>, %arg3: memref<128x128xbf16, #tpu.memory_space<vmem>>, %arg4: memref<1x8x32xf32, #tpu.memory_space<vmem>>) attributes {dimension_semantics = [#tpu.dimension_semantics<parallel>], iteration_bounds = array<i64: 2>, scalar_prefetch = 0 : i64, scratch_operands = 0 : i64, tpu.core_type = #tpu.core_type<tc>, window_params = [{pipeline_mode = #tpu.pipeline_mode<synchronous>, transform_indices = @transform_0, window_bounds = array<i64: 8, 8>}, {transform_indices = @transform_1, window_bounds = array<i64: 1, 8, 128>}, {pipeline_mode = #tpu.pipeline_mode<synchronous>, transform_indices = @transform_2, window_bounds = array<i64: 128, 128>}, {transform_indices = @transform_3, window_bounds = array<i64: 1, 8, 32>}]} {
    %c0 = arith.constant 0 : index
    %c0_0 = arith.constant 0 : index
    %c0_1 = arith.constant 0 : index
    %0 = vector.load %arg2[%c0, %c0_0, %c0_1] : memref<1x8x128xf32, #tpu.memory_space<vmem>>, vector<1x8x128xf32>
    %1 = vector.shape_cast %0 : vector<1x8x128xf32> to vector<8x128xf32>
    %2 = arith.truncf %1 : vector<8x128xf32> to vector<8x128xbf16>
    %c0_2 = arith.constant 0 : index
    %c0_3 = arith.constant 0 : index
    %3 = vector.load %arg3[%c0_2, %c0_3] : memref<128x128xbf16, #tpu.memory_space<vmem>>, vector<128x128xbf16>
    %cst = arith.constant dense<0.000000e+00> : vector<8x128xf32>
    %4 = tpu.matmul %2, %3, %cst {dimension_numbers = #tpu.dot_dimension_numbers<[1], [0], [0], [1], [0, 0, 1, 1], [], []>} : vector<8x128xbf16>, vector<128x128xbf16>, vector<8x128xf32> -> vector<8x128xf32>
    %5 = arith.truncf %4 : vector<8x128xf32> to vector<8x128xbf16>
    %6 = vector.extract_strided_slice %5 {offsets = [0, 0], sizes = [8, 32], strides = [1, 1]} : vector<8x128xbf16> to vector<8x32xbf16>
    %7 = vector.extract_strided_slice %5 {offsets = [0, 32], sizes = [8, 32], strides = [1, 1]} : vector<8x128xbf16> to vector<8x32xbf16>
    %8 = vector.extract_strided_slice %5 {offsets = [0, 64], sizes = [8, 32], strides = [1, 1]} : vector<8x128xbf16> to vector<8x32xbf16>
    %cst_4 = arith.constant -1.000000e+30 : f32
    %9 = vector.broadcast %cst_4 : f32 to vector<8x1xf32>
    %cst_5 = arith.constant 0.000000e+00 : f32
    %10 = vector.broadcast %cst_5 : f32 to vector<8x1xf32>
    %cst_6 = arith.constant 0.000000e+00 : f32
    %11 = vector.broadcast %cst_6 : f32 to vector<8x32xf32>
    %cst_7 = arith.constant dense<0.000000e+00> : vector<8x8xf32>
    %12 = tpu.matmul %6, %7, %cst_7 {dimension_numbers = #tpu.dot_dimension_numbers<[1], [1], [0], [0], [0, 0, 1, 0], [], []>} : vector<8x32xbf16>, vector<8x32xbf16>, vector<8x8xf32> -> vector<8x8xf32>
    %c0_8 = arith.constant 0 : index
    %c0_9 = arith.constant 0 : index
    %13 = vector.load %arg1[%c0_8, %c0_9] : memref<8x8xf32, #tpu.memory_space<vmem>>, vector<8x8xf32>
    %14 = arith.addf %12, %13 : vector<8x8xf32>
    %cst_10 = arith.constant dense<0xFF800000> : vector<8xf32>
    %15 = vector.multi_reduction <maximumf>, %14, %cst_10 [1] : vector<8x8xf32> to vector<8xf32>
    %16 = vector.shape_cast %15 : vector<8xf32> to vector<8x1xf32>
    %17 = arith.maximumf %9, %16 : vector<8x1xf32>
    %18 = arith.subf %9, %17 : vector<8x1xf32>
    %19 = math.exp %18 : vector<8x1xf32>
    %20 = vector.broadcast %17 : vector<8x1xf32> to vector<8x8xf32>
    %21 = arith.subf %14, %20 : vector<8x8xf32>
    %22 = math.exp %21 : vector<8x8xf32>
    %23 = arith.mulf %19, %10 : vector<8x1xf32>
    %cst_11 = arith.constant dense<0.000000e+00> : vector<8xf32>
    %24 = vector.multi_reduction <add>, %22, %cst_11 [1] : vector<8x8xf32> to vector<8xf32>
    %25 = vector.shape_cast %24 : vector<8xf32> to vector<8x1xf32>
    %26 = arith.addf %23, %25 : vector<8x1xf32>
    %27 = vector.broadcast %19 : vector<8x1xf32> to vector<8x32xf32>
    %28 = arith.mulf %27, %11 : vector<8x32xf32>
    %29 = arith.truncf %22 : vector<8x8xf32> to vector<8x8xbf16>
    %cst_12 = arith.constant dense<0.000000e+00> : vector<8x32xf32>
    %30 = tpu.matmul %29, %8, %cst_12 {dimension_numbers = #tpu.dot_dimension_numbers<[1], [0], [0], [1], [0, 0, 1, 1], [], []>} : vector<8x8xbf16>, vector<8x32xbf16>, vector<8x32xf32> -> vector<8x32xf32>
    %31 = arith.addf %28, %30 : vector<8x32xf32>
    %32 = tpu.reciprocal %26 {approx = true} : vector<8x1xf32> -> vector<8x1xf32>
    %33 = vector.broadcast %32 : vector<8x1xf32> to vector<8x32xf32>
    %34 = arith.mulf %31, %33 : vector<8x32xf32>
    %c0_13 = arith.constant 0 : index
    %c0_14 = arith.constant 0 : index
    %c0_15 = arith.constant 0 : index
    %35 = vector.load %arg4[%c0_13, %c0_14, %c0_15] : memref<1x8x32xf32, #tpu.memory_space<vmem>>, vector<1x8x32xf32>
    %36 = vector.shape_cast %35 : vector<1x8x32xf32> to vector<8x32xf32>
    %37 = vector.shape_cast %34 : vector<8x32xf32> to vector<1x8x32xf32>
    tpu.vector_store %arg4[%c0_13, %c0_14, %c0_15], %37 {strides = array<i32>} : memref<1x8x32xf32, #tpu.memory_space<vmem>>, vector<1x8x32xf32>,
    return
  }
  func.func @transform_0(%arg0: i32) -> (i32, i32) {
    %c0_i32 = arith.constant 0 : i32
    %c0_i32_0 = arith.constant 0 : i32
    %c0_i32_1 = arith.constant 0 : i32
    return %c0_i32, %c0_i32_0 : i32, i32
  }
  func.func @transform_1(%arg0: i32) -> (i32, i32, i32) {
    %c0_i32 = arith.constant 0 : i32
    %c0_i32_0 = arith.constant 0 : i32
    %c0_i32_1 = arith.constant 0 : i32
    return %arg0, %c0_i32, %c0_i32_0 : i32, i32, i32
  }
  func.func @transform_2(%arg0: i32) -> (i32, i32) {
    %c0_i32 = arith.constant 0 : i32
    %c0_i32_0 = arith.constant 0 : i32
    %c0_i32_1 = arith.constant 0 : i32
    return %c0_i32, %c0_i32_0 : i32, i32
  }
  func.func @transform_3(%arg0: i32) -> (i32, i32, i32) {
    %c0_i32 = arith.constant 0 : i32
    %c0_i32_0 = arith.constant 0 : i32
    %c0_i32_1 = arith.constant 0 : i32
    return %arg0, %c0_i32, %c0_i32_0 : i32, i32, i32
  }
}

</mosaic_0001>

<bundles_post_ra>
// kernel: tpu_custom_call.1
= control target key start
LH: loop header
LB: loop body
LE: loop exit
PB: predicated region body
PF: predicated region fallthrough
CT: control target
= control target key end

     0   :  { %8 = vsyncpa [#allocation3], 0  ;;  %s1146_s0 = inlined_call_operand.hbm [shape: f32[8,8], index: 0, kind: input, shape index: {}]   ;;  %s1147_s1 = inlined_call_operand.hbm [shape: f32[2,8,128], index: 1, kind: input, shape index: {}]   ;;  %s1148_s2 = inlined_call_operand.hbm [shape: bf16[128,128], index: 2, kind: input, shape index: {}]   ;;  %s1149_s3 = inlined_call_operand.hbm [shape: f32[2,8,32], index: 3, kind: output, shape index: {}]  }
   0x1   :  { %9 = vsyncpa [#allocation6], 0 }
   0x2   :  { %11 = vsyncpa [#allocation6 + $0x1], 0 }
   0x3   :  { %12 = vsyncpa [#allocation4], 0 }
   0x4   :  { %14 = vsyncpa [#allocation4 + $0x1], 0  ;;  %s897_s12 = smov 0   ;;  %s899_s13 = smov 0  }
   0x5   :  { %s901_s14 = smov 0   ;;  %s903_s15 = smov 0  }
   0x6 LB: > { %s918_s16 = sadd.s32 4294967295, %s865_s15   ;;  %s547_s17 = sadd.s32 4294967294, %s865_s15   ;;  %s865_s15 = sphi %s903_s15, %s1171_s15   ;;  %s861_s14 = sphi %s901_s14, %s1170_s14   ;;  %s857_s13 = sphi %s899_s13, %s1169_s13   ;;  %s853_s12 = sphi %s897_s12, %s1168_s12  }
   0x7   : > { %p61_p0 = scmp.ne.s32.totalorder %s857_s13, %s853_s12  ;;  %p1150_p1 = scmp.eq.s32.totalorder %s918_s16, 0 }
   0x8   : > { %p112_p3 = scmp.eq.s32.totalorder %s547_s17, 1  ;;  %p548_p5 = scmp.ge.s32.totalorder %s865_s15, 1 }
   0x9   : > { %p927_p4 = por %p1150_p1, %p61_p0  ;;  %p119_p7 = scmp.lt.s32.totalorder %s865_s15, 3 }
   0xa   : > { %p932_p6 = por %p112_p3, %p61_p0  ;;  %s867_s21 = smov [#allocation7]  }
   0xb   : > { %s1153_s18 = scalar_select %p927_p4, 1, 0 }
   0xc   : > { %s1154_s19 = scalar_select %p932_p6, 1, 0 }
   0xd   : > { %p937_p8 = pnand %p548_p5, %p119_p7  ;;  %s142_s22 = sshll.u32 %s867_s21, 4  ;;  %s941_s22 = int_to_ptr.vmem [resolvable:$true] %s142_s22 }
   0xe   : > { %s868_s24 = smov [#allocation2]   ;;  %s705_s28 = scalar_lea.hbm %s1148_s2, 1024 }
   0xf   : > { %p630_p9 = pneg %p937_p8  ;;  %s132_s25 = sshll.u32 %s868_s24, 4  ;;  %s952_s25 = int_to_ptr.vmem [resolvable:$true] %s132_s25 }
  0x10   : > { %p706_p12 = scmp.ne.s32.totalorder %s1148_s2, %s705_s28  ;;  %p712_p5 = scmp.lt.u32.totalorder %s705_s28, %s1148_s2 }
  0x11   : > { %p948_p11 = pnand %p630_p9, %p1150_p1 }
  0x13   : > { %p707_p13 = pneg %p948_p11 }
  0x15   : > { %p708_p0 = pnand %p707_p13, %p706_p12 }
  0x17   : > { %p709_p3 = pneg %p708_p0 }
  0x19   : > { %p714_p7 = pnand %p712_p5, %p709_p3 }
  0x1b   : > { %717 = shalt.err (!%p714_p7)
}
  0x1c   : > { %s718_s6 = scalar_lea.vmem %s941_s22, 1024  ;;  %p726_p2 = scmp.lt.s32.totalorder %s941_s22, %s941_s22 }
  0x1d   : > { %p719_p9 = scmp.ne.s32.totalorder %s941_s22, %s718_s6  ;;  %p727_p12 = scmp.lt.s32.totalorder %s718_s6, %s718_s6 }
  0x1f   : > { %p721_p10 = pnand %p719_p9, %p707_p13  ;;  %p728_p0 = por %p727_p12, %p726_p2 }
  0x21   : > { %p722_p1 = pneg %p721_p10 }
  0x23   : > { %p729_p6 = pnand %p728_p0, %p722_p1 }
  0x25   : > { %732 = shalt.err (!%p729_p6)
}
  0x26   : > { %s869_s7 = smov 64   ;;  %s870_s8 = smov 4  }
  0x27   : > { %636 = dma.hbm_to_vmem [thread:$0]  (!%p948_p11), %s1148_s2, 1024, %s941_s22, [#allocation6], %s869_s7, %s869_s7, %s870_s8  }
  0x28   : > { %s733_s21 = scalar_lea.hbm %s1146_s0, 128 }
  0x29   : > { %p734_p2 = scmp.ne.s32.totalorder %s1146_s0, %s733_s21  ;;  %p740_p10 = scmp.lt.u32.totalorder %s733_s21, %s1146_s0 }
  0x2b   : > { %p736_p1 = pnand %p734_p2, %p707_p13 }
  0x2d   : > { %p737_p6 = pneg %p736_p1 }
  0x2f   : > { %p742_p3 = pnand %p740_p10, %p737_p6 }
  0x31   : > { %745 = shalt.err (!%p742_p3)
}
  0x32   : > { %s746_s22 = scalar_lea.vmem %s952_s25, 128  ;;  %p754_p12 = scmp.lt.s32.totalorder %s952_s25, %s952_s25 }
  0x33   : > { %p747_p5 = scmp.ne.s32.totalorder %s952_s25, %s746_s22  ;;  %p755_p0 = scmp.lt.s32.totalorder %s746_s22, %s746_s22 }
  0x35   : > { %p749_p7 = pnand %p747_p5, %p707_p13  ;;  %p756_p2 = por %p755_p0, %p754_p12 }
  0x37   : > { %p750_p9 = pneg %p749_p7 }
  0x39   : > { %p757_p1 = pnand %p756_p2, %p750_p9 }
  0x3b   : > { %760 = shalt.err (!%p757_p1)
}
  0x3c   : > { %633 = dma.hbm_to_vmem [thread:$0]  (!%p948_p11), %s1146_s0, 128, %s952_s25, [#allocation3]  }
  0x3d   : > { %s1007_s4 = sadd.s32 1, %s865_s15   ;;  %s48_s23 = sadd.s32 1, %s861_s14 }
  0x3e   : > { %s45_s5 = ssub.s32 %s865_s15, %s1007_s4  ;;  %p55_p13 = scmp.ne.s32.totalorder %s861_s14, %s857_s13 }
  0x3f   : > { %p46_p6 = scmp.eq.s32.totalorder %s45_s5, 0  ;;  %p56_p10 = scmp.eq.s32.totalorder %s865_s15, 0 }
  0x40   : > { %p1157_p3 = scmp.eq.s32.totalorder %s918_s16, 1  ;;  %p647_p7 = scmp.lt.s32.totalorder %s865_s15, 2 }
  0x41   : > { %s1023_s7 = scalar_select %p46_p6, %s861_s14, %s48_s23  }
  0x42   : > { %p1017_p5 = por %p1157_p3, %p55_p13  ;;  %p57_p9 = por %p56_p10, %p55_p13 }
  0x43   : > { %s156_s8 = sand.u32 1, %s865_s15   ;;  %s158_s9 = sand.u32 1, %s861_s14  }
  0x44   : > { %s1158_s6 = scalar_select %p1017_p5, 1, 0 }
  0x45   : > { %s552_s25 = sshll.u32 %s158_s9, 3  ;;  %s553_s10 = sshll.u32 %s865_s15, 7 }
  0x46   : > { %s1031_s21 = scalar_lea.hbm %s1147_s1, %s553_s10  ;;  %s160_s24 = scalar_lea.vmem [#allocation5], %s552_s25 }
  0x47   : > { %s167_s26 = sshll.u32 %s160_s24, 4  ;;  %p1033_p11 = pnand %p647_p7, %p57_p9  ;;  %s1037_s26 = int_to_ptr.vmem [resolvable:$true] %s167_s26 }
  0x48   : > { %s157_s28 = scalar_lea.sflag [#allocation6], %s156_s8  ;;  %s761_s22 = scalar_lea.hbm %s1031_s21, 128 }
  0x49   : > { %p762_p12 = scmp.ne.s32.totalorder %s1031_s21, %s761_s22  ;;  %p763_p0 = pneg %p1033_p11 }
  0x4a   : > { %s766_s23 = scalar_lea.hbm %s1147_s1, 256  ;;  %p767_p13 = scmp.lt.u32.totalorder %s1031_s21, %s1147_s1 }
  0x4b   : > { %p764_p2 = pnand %p763_p0, %p762_p12  ;;  %p768_p6 = scmp.lt.u32.totalorder %s766_s23, %s761_s22 }
  0x4c   : > { %p770_p3 = scmp.lt.u32.totalorder %s761_s22, %s1031_s21 }
  0x4d   : > { %p765_p1 = pneg %p764_p2  ;;  %p769_p10 = por %p768_p6, %p767_p13 }
  0x4f   : > { %p771_p7 = por %p770_p3, %p769_p10 }
  0x51   : > { %p772_p9 = pnand %p771_p7, %p765_p1 }
  0x53   : > { %775 = shalt.err (!%p772_p9)
}
  0x54   : > { %s776_s8 = scalar_lea.vmem %s1037_s26, 128  ;;  %s871_s25 = smov [#allocation5]  }
  0x55   : > { %p777_p12 = scmp.ne.s32.totalorder %s1037_s26, %s776_s8  ;;  %s781_s10 = sshll.u32 %s871_s25, 4  ;;  %s782_s10 = int_to_ptr.vmem [resolvable:$false] %s781_s10 }
  0x56   : > { %s783_s11 = scalar_lea.vmem %s782_s10, 256  ;;  %p784_p4 = scmp.lt.s32.totalorder %s1037_s26, %s782_s10 }
  0x57   : > { %p779_p2 = pnand %p777_p12, %p763_p0  ;;  %p785_p13 = scmp.lt.s32.totalorder %s783_s11, %s776_s8 }
  0x59   : > { %p780_p5 = pneg %p779_p2  ;;  %p786_p6 = por %p785_p13, %p784_p4 }
  0x5b   : > { %p787_p10 = pnand %p786_p6, %p780_p5 }
  0x5d   : > { %790 = shalt.err (!%p787_p10)
}
  0x5e   : > { %640 = dma.hbm_to_vmem [thread:$0]  (!%p1033_p11), %s1031_s21, 128, %s1037_s26, %s157_s28  }
  0x5f   : > { %176 = sbr.rel (%p937_p8) target bundleno = 1088 (0x440), region = 32  ;;  %p1160_p0 = scmp.eq.s32.totalorder (!%p937_p8), %s918_s16, 0 }
  0x66   : > { %836 = dma.done.wait (%p1160_p0), [#allocation3], 128   ;;  %p1161_p1 = pmov %p1160_p0 }
  0x67   : > { %s182_s17 = sand.u32 1, %s918_s16   ;;  %s184_s24 = sand.u32 1, %s857_s13  }
  0x68   : > { %838 = vsyncadd (%p1161_p1), [#allocation3], 4294967168  ;;  %s1074_s27 = sshll.u32 %s184_s24, 3  ;;  %s183_s21 = scalar_lea.sflag [#allocation6], %s182_s17 }
  0x69   : > { %s186_s26 = scalar_lea.vmem [#allocation5], %s1074_s27  ;;  %p1162_p4 = scmp.ne.s32.totalorder %s1153_s18, 0 }
  0x6b   : > { %840 = dma.done.wait (%p1162_p4), %s183_s21, 128  }
  0x6c   : > { %842 = vsyncadd (%p1162_p4), %s183_s21, 4294967168  ;;  %p1163_p8 = pmov %p1160_p0 }
  0x6d   : > { %p1164_p5 = pmov %p1160_p0 }
  0x6e   : > { %844 = dma.done.wait (%p1163_p8), [#allocation6], 1024  }
  0x6f   : > { %846 = vsyncadd (%p1164_p5), [#allocation6], 4294966272  ;;  %v872_v0 = vmov 0.0   ;;  %vm873_vm0 = vmmov 0   ;;  %v691_v1 = vld [vmem:[#allocation7] sm:$0xff]   ;;  %v692_v2 = vld [vmem:[#allocation7 + $0x8] sm:$0xff]  }
  0x70   : > { %586 = vmatprep.subr.bf16.mxu0 %v872_v0  ;;  %602 = vmatprep.mubr.msk.bf16.mxu0 %vm873_vm0, %v872_v0  ;;  %v693_v3 = vld [vmem:[#allocation7 + $0x10] sm:$0xff]   ;;  %v694_v4 = vld [vmem:[#allocation7 + $0x18] sm:$0xff]   ;;  %v695_v5 = vld [vmem:[#allocation7 + $0x20] sm:$0xff]   ;;  %s874_s18 = smov 64   ;;  %s875_s20 = smov 96   ;;  %vm325_vm1 = vcmask 261120  }
  0x71   : > { %606 = vmatprep.subr.bf16.mxu1 %v872_v0  ;;  %608 = vmatprep.mubr.msk.bf16.mxu1 %vm873_vm0, %v872_v0  ;;  %v696_v6 = vld [vmem:[#allocation7 + $0x28] sm:$0xff]   ;;  %v697_v7 = vld [vmem:[#allocation7 + $0x30] sm:$0xff]   ;;  %v698_v8 = vld [vmem:[#allocation7 + $0x38] sm:$0xff]   ;;  %vm394_vm2 = vcmask 1043456   ;;  %vm372_vm3 = vcmask 64512   ;;  %s570_s28 = sshll.u32 %s918_s16, 7 }
  0x72   : > { %587 = vmatpush3.bf16.msra.mxu0 %v691_v1  ;;  %v214_v9 = vld [vmem:[%s186_s26] sm:$0xff]  ;;  %v321_v20 = vld [vmem:[#allocation2] sm:$0xff]  ;;  %s212_s22 = scalar_lea.vmem [#allocation8], %s1074_s27  ;;  %s1100_s5 = scalar_lea.hbm %s1149_s3, %s570_s28 }
  0x73   : > { %588 = vmatprep.subr.bf16.mxu0 %v872_v0  ;;  %v215_v10 = vpack.c.bf16 %v214_v9, %v214_v9  ;;  %s456_s29 = sshll.u32 %s212_s22, 4  ;;  %s443_s16 = scalar_lea.sflag [#allocation4], %s184_s24  ;;  %s1102_s29 = int_to_ptr.vmem [resolvable:$true] %s456_s29 }
  0x74   : > { %s791_s9 = scalar_lea.vmem %s1102_s29, 128  ;;  %p1165_p3 = scmp.ne.s32.totalorder %s1158_s6, 0 }
  0x75   : > { %p792_p11 = scmp.ne.s32.totalorder %s1102_s29, %s791_s9  ;;  %s876_s8 = smov [#allocation8]  }
  0x76   : > { %589 = vmatpush3.bf16.msra.mxu0 %v692_v2  ;;  %s795_s25 = sshll.u32 %s876_s8, 4  ;;  %s796_s25 = int_to_ptr.vmem [resolvable:$false] %s795_s25 }
  0x77   : > { %590 = vmatprep.subr.bf16.mxu0 %v872_v0  ;;  %p793_p7 = pnand %p792_p11, %p1165_p3  ;;  %s797_s10 = scalar_lea.vmem %s796_s25, 256 }
  0x78   : > { %p798_p12 = scmp.lt.s32.totalorder %s1102_s29, %s796_s25  ;;  %p799_p2 = scmp.lt.s32.totalorder %s797_s10, %s791_s9 }
  0x79   : > { %p794_p9 = pneg %p793_p7 }
  0x7a   : > { %591 = vmatpush3.bf16.msra.mxu0 %v693_v3  ;;  %p800_p13 = por %p799_p2, %p798_p12 }
  0x7b   : > { %592 = vmatprep.subr.bf16.mxu0 %v872_v0 }
  0x7c   : > { %p801_p6 = pnand %p800_p13, %p794_p9 }
  0x7e   : > { %593 = vmatpush3.bf16.msra.mxu0 %v694_v4 }
  0x7f   : > { %594 = vmatprep.subr.bf16.mxu0 %v872_v0 }
  0x82   : > { %595 = vmatpush3.bf16.msra.mxu0 %v695_v5 }
  0x83   : > { %596 = vmatprep.subr.bf16.mxu0 %v872_v0 }
  0x86   : > { %597 = vmatpush3.bf16.msra.mxu0 %v696_v6 }
  0x87   : > { %598 = vmatprep.subr.bf16.mxu0 %v872_v0 }
  0x8a   : > { %599 = vmatpush3.bf16.msra.mxu0 %v697_v7 }
  0x8b   : > { %600 = vmatprep.subr.bf16.mxu0 %v872_v0 }
  0x8e   : > { %601 = vmatpush3.bf16.msra.mxu0 %v698_v8 }
  0x91   : > { %603 = vmatmul.mubr.bf16.vlgmr.msra.gmra.mrb[0].mxu0 %v215_v10 }
 0x164   : > { %v314_v11 = vpop.f32.mrb[0].mxu0 }
 0x165   : > { %v320_v12 = vpack.c.bf16 %v314_v11, %v314_v11  ;;  %v604_v13 = vpop.f32.mrb[1].mxu0 }
 0x166   : > { %v317_v14 = vpop.f32.mrb[2].mxu0 }
 0x167   : > { %389 = vrot.lane.b32.xlu1 %v320_v12, %s874_s18  ;;  %323 = vrot.lane.b32.xlu0 %v320_v12, %s875_s20  ;;  %v605_v15 = vpop.f32.mrb[3].mxu0 }
 0x1d9   : > { %v324_v16 = vpop.permute.xlu0 %323  ;;  %v390_v18 = vpop.permute.xlu1 %389 }
 0x1da   : > { %v330_v17 = vsel %vm325_vm1, %v324_v16, 0  ;;  %v396_v19 = vsel %vm394_vm2, %v390_v18, 0 }
 0x1db   : > { %607 = vmatpush3.bf16.xpose.msra.mxu1 %v330_v17 }
 0x1dc   : > { %612 = vmatprep.subr.bf16.mxu1 %v872_v0 }
 0x1e2   : > { %609 = vmatmul.mubr.msk.bf16.vlgmr.msra.gmra.mrb[0].mxu1 %vm325_vm1, %v320_v12 }
 0x1e3   : > { %613 = vmatpush3.bf16.msra.mxu1 %v396_v19  ;;  %614 = vmatprep.mubr.msk.bf16.mxu1 %vm873_vm0, %v872_v0 }
 0x2b5   : > { %v366_v21 = vpop.f32.mrb[0].mxu1 }
 0x2b6   : > { %v367_v22 = vadd.f32 %v366_v21, %v321_v20  ;;  %v610_v23 = vpop.f32.mrb[1].mxu1 }
 0x2b7   : > { %v369_v24 = vpop.f32.mrb[2].mxu1 }
 0x2b8   : > { %v611_v25 = vpop.f32.mrb[3].mxu1  ;;  %v373_v26 = vsel %vm372_vm3, %v367_v22, -inf }
 0x2b9   : > { %374 = vmax.xlane.f32.xlu0 %v373_v26 }
 0x346   : > { %v375_v27 = vpop.xlane.xlu0 %374 }
 0x347   : > { %v376_v28 = vmax.f32 %v375_v27, -1e+30 }
 0x349   : > { %v380_v29 = vsub.f32 %v367_v22, %v376_v28  ;;  %v377_v34 = vsub.f32 -1e+30, %v376_v28 }
 0x34b   : > { %v381_v30 = vmul.f32 1.442695, %v380_v29  ;;  %v378_v35 = vmul.f32 1.442695, %v377_v34 }
 0x34d   : > { %699 = vpow2.f32 %v381_v30 }
 0x34e   : > { %701 = vpow2.f32 %v378_v35 }
 0x357   : > { %v700_v31 = vpop.eup %699 }
 0x358   : > { %v384_v32 = vsel %vm372_vm3, %v700_v31, 0.0  ;;  %v388_v33 = vpack.c.bf16 %v700_v31, %v700_v31  ;;  %v702_v36 = vpop.eup %701 }
 0x359   : > { %385 = vadd.xlane.f32.xlu1 %v384_v32  ;;  %v383_v38 = vmul.f32 0.0, %v702_v36 }
 0x35a   : > { %615 = vmatmul.mubr.msk.bf16.vlgmr.msra.gmra.mrb[4].mxu1 %vm372_vm3, %v388_v33 }
 0x3e6   : > { %v386_v37 = vpop.xlane.xlu1 %385 }
 0x3e7   : > { %v387_v39 = vadd.f32 %v386_v37, %v383_v38 }
 0x3e9   : > { %703 = vrcp.f32 %v387_v39 }
 0x3f3   : > { %v704_v43 = vpop.eup %703 }
 0x42d   : > { %v432_v40 = vpop.f32.mrb[4].mxu1 }
 0x42e   : > { %v438_v41 = vadd.f32 %v432_v40, %v383_v38  ;;  %v616_v42 = vpop.f32.mrb[5].mxu1 }
 0x42f   : > { %v435_v44 = vpop.f32.mrb[6].mxu1 }
 0x430   : > { %v440_v45 = vmul.f32 %v704_v43, %v438_v41  ;;  %v617_v46 = vpop.f32.mrb[7].mxu1 }
 0x432   : > { %441 = vst.msk [vmem:[%s212_s22] sm:$0xff] %vm325_vm1, %v440_v45 }
 0x433   : > { %804 = shalt.err (!%p801_p6)
}
 0x434   : > { %s805_s11 = scalar_lea.hbm %s1100_s5, 128  ;;  %s809_s27 = scalar_lea.hbm %s1149_s3, 256 }
 0x435   : > { %p806_p10 = scmp.ne.s32.totalorder %s1100_s5, %s805_s11  ;;  %p810_p4 = scmp.lt.u32.totalorder %s1100_s5, %s1149_s3 }
 0x436   : > { %p811_p8 = scmp.lt.u32.totalorder %s809_s27, %s805_s11  ;;  %p813_p11 = scmp.lt.u32.totalorder %s805_s11, %s1100_s5 }
 0x437   : > { %p807_p0 = pnand %p806_p10, %p1165_p3 }
 0x438   : > { %p812_p5 = por %p811_p8, %p810_p4 }
 0x439   : > { %p808_p1 = pneg %p807_p0 }
 0x43a   : > { %p814_p7 = por %p813_p11, %p812_p5 }
 0x43c   : > { %p815_p9 = pnand %p814_p7, %p808_p1 }
 0x43e   : > { %818 = shalt.err (!%p815_p9)
}
 0x43f   : > { %628 = dma.vmem_to_hbm [thread:$0]  (%p1165_p3), %s1102_s29, 128, %s1100_s5, %s443_s16  }
 0x440 PF: > { %s468_s18 = sand.u32 1, %s853_s12   ;;  %p1166_p12 = scmp.ne.s32.totalorder %s1154_s19, 0 }
 0x441   : > { %p1167_p2 = scmp.ge.s32.totalorder %s865_s15, 2  ;;  %s469_s20 = scalar_lea.sflag [#allocation4], %s468_s18 }
 0x443   : > { %p642_p13 = pnand %p1167_p2, %p1166_p12 }
 0x445   : > { %848 = dma.done.wait (!%p642_p13), %s469_s20, 128  }
 0x446   : > { %850 = vsyncadd (!%p642_p13), %s469_s20, 4294967168  ;;  %p17_p6 = scmp.ge.s32.totalorder %s1007_s4, 4   ;;  %s1168_s12 = smov %s857_s13 }
 0x447   : > { %s1169_s13 = smov %s861_s14  ;;  %s1170_s14 = smov %s1023_s7 }
 0x448   : > { %s1171_s15 = smov %s1007_s4  ;;  %19 = sbr.rel (!%p17_p6) target bundleno = 6 (0x6), region = 86 }
 0x44f   :  { %474 = vsyncpa [#allocation3], 1 }
 0x450   :  { %476 = vsyncpa [#allocation3 + $0x1], 1 }
 0x451   :  { %477 = vsyncpa [#allocation6], 1 }
 0x452   :  { %479 = vsyncpa [#allocation6 + $0x1], 1 }
 0x453   :  { %480 = vsyncpa [#allocation4], 1 }
 0x454   :  { %482 = vsyncpa [#allocation4 + $0x1], 1 }

</bundles_post_ra>
